<compile_context>
chip_gen: v7x
topology: tpu7x:2x2x1
jax: 0.10.0
libtpu: 0.0.40
codegen_flags: <defaults>
</compile_context>

<pallas_src>
import functools

import jax
import jax.numpy as jnp
import numpy as np
from jax.experimental import pallas as pl
from jax.experimental.pallas import tpu as pltpu


def _make_kernel(n_layers, batch, seq, input_size, hidden_dim, output_size):
    L, B, T, I, H, O = n_layers, batch, seq, input_size, hidden_dim, output_size

    # Static row offsets inside the packed (R, H) parameter slab:
    #   [ W_ih layer0 (I rows) | W_ih layers 1..L-1 (H rows each) |
    #     W_hh layers 0..L-1 (H rows each) | biases (1 row per layer) ]
    wih0_off = 0
    wih_off = I                    # start of W_ih for layers >= 1
    whh_off = I + (L - 1) * H      # start of W_hh block
    b_off = I + (2 * L - 1) * H    # start of bias block

    def kernel(x_ref, slab_ref, fc_ref, out_ref, hid_ref, seq_tm, fc_in_bm):
        # x_ref:     (T*B, I)  time-major flattened input (wrapper transposed).
        # slab_ref:  (R, H)    packed RNN weights + biases (single DMA).
        # fc_ref:    (H+1, O)  packed [fc_w ; fc_b] (single DMA).
        # out_ref:   (B*T, O)  FC output, batch-major (matches .view(-1, H)).
        # hid_ref:   (L, B, H) final hidden state.
        # seq_tm:    VMEM (T*B, H) time-major inter-layer sequence buffer.
        # fc_in_bm:  VMEM (B*T, H) batch-major top-layer sequence (FC input).

        # Biases loaded once (aligned block), off the recurrence chain.
        b_all = slab_ref[pl.ds(b_off, L), :]                    # (L, H)

        for l in range(L):
            # ---- hoisted input projection: ONE MXU matmul per layer --------
            if l == 0:
                in_rows, w_row0 = I, wih0_off
                inp_flat = x_ref[...]                           # (T*B, I)
            else:
                in_rows, w_row0 = H, wih_off + (l - 1) * H
                inp_flat = seq_tm[...]                          # (T*B, H)
            w_ih = slab_ref[pl.ds(w_row0, in_rows), :]          # (in_rows, H)
            w_hh = slab_ref[pl.ds(whh_off + l * H, H), :]       # (H, H)
            pre = jnp.dot(inp_flat, w_ih,
                          preferred_element_type=jnp.float32)
            pre = pre + b_all[l:l + 1, :]                       # bias folded once

            # ---- serial recurrence: only h @ W_hh, add, tanh on the chain --
            h = jnp.zeros((B, H), jnp.float32)
            for t in range(T):
                h = jnp.tanh(
                    pre[t * B:(t + 1) * B, :]
                    + jnp.dot(h, w_hh, preferred_element_type=jnp.float32))
                if l < L - 1:
                    # contiguous time-major rows for next layer's projection
                    seq_tm[pl.ds(t * B, B), :] = h
                else:
                    # batch-major scatter (off-chain) feeding the FC head
                    for b in range(B):
                        fc_in_bm[pl.ds(b * T + t, 1), :] = h[b:b + 1, :]
            hid_ref[l] = h                                       # final hidden

        # ---- FC head: one MXU matmul on the batch-major slab, one store ----
        fc_w = fc_ref[pl.ds(0, H), :]                            # (H, O)
        fc_b = fc_ref[pl.ds(H, 1), :]                            # (1, O)
        y = jnp.dot(fc_in_bm[...], fc_w,
                    preferred_element_type=jnp.float32) + fc_b
        out_ref[...] = y.astype(out_ref.dtype)

    return kernel


def rnn_forward(x, slab, fc, *, n_layers, input_size, hidden_dim, output_size):
    """x: (B, T, input_size) f32. Returns (out (B*T, O), hidden (L, B, H))."""
    B, T, I = x.shape
    H, O, L = hidden_dim, output_size, n_layers
    R = slab.shape[0]

    # Layout plumbing in the wrapper (free XLA transpose/reshape): the kernel
    # consumes a time-major flattened (T*B, I) slab, never slicing x[:, t, :].
    x_tm = jnp.transpose(x, (1, 0, 2)).reshape(T * B, I)

    flops = 0
    for l in range(L):
        in_dim = I if l == 0 else H
        flops += 2 * T * B * in_dim * H      # hoisted input projection
        flops += 2 * T * B * H * H           # recurrent matmuls
    flops += 2 * B * T * H * O               # FC head
    transcendentals = L * T * B * H
    bytes_accessed = 4 * (T * B * I + int(slab.size) + int(fc.size)
                          + B * T * O + L * B * H)

    out, hidden = pl.pallas_call(
        _make_kernel(L, B, T, I, H, O),
        out_shape=(
            jax.ShapeDtypeStruct((B * T, O), jnp.float32),
            jax.ShapeDtypeStruct((L, B, H), jnp.float32),
        ),
        grid_spec=pltpu.PrefetchScalarGridSpec(
            num_scalar_prefetch=0,
            grid=(1,),                    # collapsed grid: whole sequence per call
            in_specs=[
                pl.BlockSpec((T * B, I), lambda i: (0, 0)),
                pl.BlockSpec((R, H), lambda i: (0, 0)),
                pl.BlockSpec((H + 1, O), lambda i: (0, 0)),
            ],
            out_specs=(
                pl.BlockSpec((B * T, O), lambda i: (0, 0)),
                pl.BlockSpec((L, B, H), lambda i: (0, 0, 0)),
            ),
            scratch_shapes=[
                pltpu.VMEM((T * B, H), jnp.float32),   # time-major inter-layer seq
                pltpu.VMEM((B * T, H), jnp.float32),   # batch-major FC input
            ],
        ),
        compiler_params=pltpu.CompilerParams(
            dimension_semantics=("arbitrary",),
            vmem_limit_bytes=32 * 1024 * 1024,
        ),
        cost_estimate=pl.CostEstimate(
            flops=flops,
            transcendentals=transcendentals,
            bytes_accessed=bytes_accessed,
        ),
    )(x_tm, slab, fc)

    return out, hidden


def init_params(key, input_size, hidden_dim, output_size, n_layers):
    """Deterministic raw params, PyTorch-style uniform(-1/sqrt(H), 1/sqrt(H))."""
    k = 1.0 / np.sqrt(hidden_dim)
    layers = []
    for layer in range(n_layers):
        in_dim = input_size if layer == 0 else hidden_dim
        key, k1, k2, k3, k4 = jax.random.split(key, 5)
        w_ih = jax.random.uniform(k1, (hidden_dim, in_dim), jnp.float32, -k, k)
        w_hh = jax.random.uniform(k2, (hidden_dim, hidden_dim), jnp.float32, -k, k)
        b_ih = jax.random.uniform(k3, (hidden_dim,), jnp.float32, -k, k)
        b_hh = jax.random.uniform(k4, (hidden_dim,), jnp.float32, -k, k)
        layers.append((w_ih, w_hh, b_ih, b_hh))
    key, k5, k6 = jax.random.split(key, 3)
    fc_w = jax.random.uniform(k5, (output_size, hidden_dim), jnp.float32, -k, k)
    fc_b = jax.random.uniform(k6, (output_size,), jnp.float32, -k, k)
    return {"layers": layers, "fc_w": fc_w, "fc_b": fc_b}


def pack_params(raw, input_size, hidden_dim, output_size, n_layers):
    """Pack all RNN weights/biases into one (R, H) slab and FC into (H+1, O)."""
    H, O = hidden_dim, output_size
    rows = [raw["layers"][0][0].T]                         # W_ih layer 0: (I, H)
    for l in range(1, n_layers):
        rows.append(raw["layers"][l][0].T)                 # W_ih layers>=1: (H, H)
    for l in range(n_layers):
        rows.append(raw["layers"][l][1].T)                 # W_hh: (H, H)
    for l in range(n_layers):
        _, _, b_ih, b_hh = raw["layers"][l]
        rows.append((b_ih + b_hh).reshape(1, H))           # combined bias (exact)
    slab = jnp.concatenate(rows, axis=0)                   # (R, H)
    fc = jnp.concatenate(
        [raw["fc_w"].T, raw["fc_b"].reshape(1, O)], axis=0)  # (H+1, O)
    return slab, fc


def reference_forward(x, raw, *, n_layers, hidden_dim):
    """Pure-JAX reference (PyTorch nn.RNN semantics, tanh nonlinearity)."""
    B, T, _ = x.shape
    inp = x
    hiddens = []
    for l in range(n_layers):
        w_ih, w_hh, b_ih, b_hh = raw["layers"][l]
        h = jnp.zeros((B, hidden_dim), jnp.float32)
        outs = []
        for t in range(T):
            h = jnp.tanh(inp[:, t, :] @ w_ih.T + b_ih + h @ w_hh.T + b_hh)
            outs.append(h)
        inp = jnp.stack(outs, axis=1)                      # (B, T, H)
        hiddens.append(h)
    out = inp.reshape(B * T, hidden_dim) @ raw["fc_w"].T + raw["fc_b"]
    return out, jnp.stack(hiddens, axis=0)


if __name__ == "__main__":
    batch, seq = 2, 8
    input_size, hidden_dim, output_size, n_layers = 16, 32, 16, 2

    key = jax.random.PRNGKey(0)
    key, xk = jax.random.split(key)
    x = jax.random.normal(xk, (batch, seq, input_size), jnp.float32)
    raw = init_params(key, input_size, hidden_dim, output_size, n_layers)
    slab, fc = pack_params(raw, input_size, hidden_dim, output_size, n_layers)

    fwd = jax.jit(functools.partial(
        rnn_forward,
        n_layers=n_layers, input_size=input_size,
        hidden_dim=hidden_dim, output_size=output_size,
    ))
    out, hidden = fwd(x, slab, fc)
    jax.block_until_ready((out, hidden))

    ref_out, ref_hidden = reference_forward(
        x, raw, n_layers=n_layers, hidden_dim=hidden_dim)

    assert out.shape == (batch * seq, output_size)
    assert hidden.shape == (n_layers, batch, hidden_dim)
    np.testing.assert_allclose(np.asarray(out), np.asarray(ref_out),
                               rtol=1e-5, atol=1e-5)
    np.testing.assert_allclose(np.asarray(hidden), np.asarray(ref_hidden),
                               rtol=1e-5, atol=1e-5)

    print("KERNEL_OK")
</pallas_src>

<mosaic_0001>
module attributes {stable_mosaic.version = 11 : i64} {
  func.func @kernel(%arg0: i32, %arg1: memref<16x16xf32, #tpu.memory_space<vmem>>, %arg2: memref<114x32xf32, #tpu.memory_space<vmem>>, %arg3: memref<33x16xf32, #tpu.memory_space<vmem>>, %arg4: memref<16x16xf32, #tpu.memory_space<vmem>>, %arg5: memref<2x2x32xf32, #tpu.memory_space<vmem>>, %arg6: memref<16x32xf32, #tpu.memory_space<vmem>>, %arg7: memref<16x32xf32, #tpu.memory_space<vmem>>) attributes {dimension_semantics = [#tpu.dimension_semantics<arbitrary>], iteration_bounds = array<i64: 1>, scalar_prefetch = 0 : i64, scratch_operands = 2 : i64, tpu.core_type = #tpu.core_type<tc>, window_params = [{pipeline_mode = #tpu.pipeline_mode<synchronous>, transform_indices = @transform_0, window_bounds = array<i64: 16, 16>}, {pipeline_mode = #tpu.pipeline_mode<synchronous>, transform_indices = @transform_1, window_bounds = array<i64: 114, 32>}, {pipeline_mode = #tpu.pipeline_mode<synchronous>, transform_indices = @transform_2, window_bounds = array<i64: 33, 16>}, {pipeline_mode = #tpu.pipeline_mode<synchronous>, transform_indices = @transform_3, window_bounds = array<i64: 16, 16>}, {pipeline_mode = #tpu.pipeline_mode<synchronous>, transform_indices = @transform_4, window_bounds = array<i64: 2, 2, 32>}]} {
    %c112 = arith.constant 112 : index
    %c0 = arith.constant 0 : index
    %0 = vector.load %arg2[%c112, %c0] : memref<114x32xf32, #tpu.memory_space<vmem>>, vector<2x32xf32>
    %c0_0 = arith.constant 0 : index
    %c0_1 = arith.constant 0 : index
    %1 = vector.load %arg1[%c0_0, %c0_1] : memref<16x16xf32, #tpu.memory_space<vmem>>, vector<16x16xf32>
    %c0_2 = arith.constant 0 : index
    %c0_3 = arith.constant 0 : index
    %2 = vector.load %arg2[%c0_2, %c0_3] : memref<114x32xf32, #tpu.memory_space<vmem>>, vector<16x32xf32>
    %c48 = arith.constant 48 : index
    %c0_4 = arith.constant 0 : index
    %3 = vector.load %arg2[%c48, %c0_4] : memref<114x32xf32, #tpu.memory_space<vmem>>, vector<32x32xf32>
    %cst = arith.constant dense<0.000000e+00> : vector<16x32xf32>
    %4 = tpu.matmul %1, %2, %cst {dimension_numbers = #tpu.dot_dimension_numbers<[1], [0], [0], [1], [0, 0, 1, 1], [], []>} : vector<16x16xf32>, vector<16x32xf32>, vector<16x32xf32> -> vector<16x32xf32>
    %5 = vector.extract_strided_slice %0 {offsets = [0, 0], sizes = [1, 32], strides = [1, 1]} : vector<2x32xf32> to vector<1x32xf32>
    %6 = vector.broadcast %5 : vector<1x32xf32> to vector<16x32xf32>
    %7 = arith.addf %4, %6 : vector<16x32xf32>
    %cst_5 = arith.constant 0.000000e+00 : f32
    %8 = vector.broadcast %cst_5 : f32 to vector<2x32xf32>
    %9 = vector.extract_strided_slice %7 {offsets = [0, 0], sizes = [2, 32], strides = [1, 1]} : vector<16x32xf32> to vector<2x32xf32>
    %cst_6 = arith.constant dense<0.000000e+00> : vector<2x32xf32>
    %10 = tpu.matmul %8, %3, %cst_6 {dimension_numbers = #tpu.dot_dimension_numbers<[1], [0], [0], [1], [0, 0, 1, 1], [], []>} : vector<2x32xf32>, vector<32x32xf32>, vector<2x32xf32> -> vector<2x32xf32>
    %11 = arith.addf %9, %10 : vector<2x32xf32>
    %12 = math.tanh %11 : vector<2x32xf32>
    %c0_7 = arith.constant 0 : index
    %c0_8 = arith.constant 0 : index
    %13 = vector.load %arg6[%c0_7, %c0_8] : memref<16x32xf32, #tpu.memory_space<vmem>>, vector<2x32xf32>
    tpu.vector_store %arg6[%c0_7, %c0_8], %12 {strides = array<i32>} : memref<16x32xf32, #tpu.memory_space<vmem>>, vector<2x32xf32>,
    %14 = vector.extract_strided_slice %7 {offsets = [2, 0], sizes = [2, 32], strides = [1, 1]} : vector<16x32xf32> to vector<2x32xf32>
    %cst_9 = arith.constant dense<0.000000e+00> : vector<2x32xf32>
    %15 = tpu.matmul %12, %3, %cst_9 {dimension_numbers = #tpu.dot_dimension_numbers<[1], [0], [0], [1], [0, 0, 1, 1], [], []>} : vector<2x32xf32>, vector<32x32xf32>, vector<2x32xf32> -> vector<2x32xf32>
    %16 = arith.addf %14, %15 : vector<2x32xf32>
    %17 = math.tanh %16 : vector<2x32xf32>
    %c2 = arith.constant 2 : index
    %c0_10 = arith.constant 0 : index
    %18 = vector.load %arg6[%c2, %c0_10] : memref<16x32xf32, #tpu.memory_space<vmem>>, vector<2x32xf32>
    tpu.vector_store %arg6[%c2, %c0_10], %17 {strides = array<i32>} : memref<16x32xf32, #tpu.memory_space<vmem>>, vector<2x32xf32>,
    %19 = vector.extract_strided_slice %7 {offsets = [4, 0], sizes = [2, 32], strides = [1, 1]} : vector<16x32xf32> to vector<2x32xf32>
    %cst_11 = arith.constant dense<0.000000e+00> : vector<2x32xf32>
    %20 = tpu.matmul %17, %3, %cst_11 {dimension_numbers = #tpu.dot_dimension_numbers<[1], [0], [0], [1], [0, 0, 1, 1], [], []>} : vector<2x32xf32>, vector<32x32xf32>, vector<2x32xf32> -> vector<2x32xf32>
    %21 = arith.addf %19, %20 : vector<2x32xf32>
    %22 = math.tanh %21 : vector<2x32xf32>
    %c4 = arith.constant 4 : index
    %c0_12 = arith.constant 0 : index
    %23 = vector.load %arg6[%c4, %c0_12] : memref<16x32xf32, #tpu.memory_space<vmem>>, vector<2x32xf32>
    tpu.vector_store %arg6[%c4, %c0_12], %22 {strides = array<i32>} : memref<16x32xf32, #tpu.memory_space<vmem>>, vector<2x32xf32>,
    %24 = vector.extract_strided_slice %7 {offsets = [6, 0], sizes = [2, 32], strides = [1, 1]} : vector<16x32xf32> to vector<2x32xf32>
    %cst_13 = arith.constant dense<0.000000e+00> : vector<2x32xf32>
    %25 = tpu.matmul %22, %3, %cst_13 {dimension_numbers = #tpu.dot_dimension_numbers<[1], [0], [0], [1], [0, 0, 1, 1], [], []>} : vector<2x32xf32>, vector<32x32xf32>, vector<2x32xf32> -> vector<2x32xf32>
    %26 = arith.addf %24, %25 : vector<2x32xf32>
    %27 = math.tanh %26 : vector<2x32xf32>
    %c6 = arith.constant 6 : index
    %c0_14 = arith.constant 0 : index
    %28 = vector.load %arg6[%c6, %c0_14] : memref<16x32xf32, #tpu.memory_space<vmem>>, vector<2x32xf32>
    tpu.vector_store %arg6[%c6, %c0_14], %27 {strides = array<i32>} : memref<16x32xf32, #tpu.memory_space<vmem>>, vector<2x32xf32>,
    %29 = vector.extract_strided_slice %7 {offsets = [8, 0], sizes = [2, 32], strides = [1, 1]} : vector<16x32xf32> to vector<2x32xf32>
    %cst_15 = arith.constant dense<0.000000e+00> : vector<2x32xf32>
    %30 = tpu.matmul %27, %3, %cst_15 {dimension_numbers = #tpu.dot_dimension_numbers<[1], [0], [0], [1], [0, 0, 1, 1], [], []>} : vector<2x32xf32>, vector<32x32xf32>, vector<2x32xf32> -> vector<2x32xf32>
    %31 = arith.addf %29, %30 : vector<2x32xf32>
    %32 = math.tanh %31 : vector<2x32xf32>
    %c8 = arith.constant 8 : index
    %c0_16 = arith.constant 0 : index
    %33 = vector.load %arg6[%c8, %c0_16] : memref<16x32xf32, #tpu.memory_space<vmem>>, vector<2x32xf32>
    tpu.vector_store %arg6[%c8, %c0_16], %32 {strides = array<i32>} : memref<16x32xf32, #tpu.memory_space<vmem>>, vector<2x32xf32>,
    %34 = vector.extract_strided_slice %7 {offsets = [10, 0], sizes = [2, 32], strides = [1, 1]} : vector<16x32xf32> to vector<2x32xf32>
    %cst_17 = arith.constant dense<0.000000e+00> : vector<2x32xf32>
    %35 = tpu.matmul %32, %3, %cst_17 {dimension_numbers = #tpu.dot_dimension_numbers<[1], [0], [0], [1], [0, 0, 1, 1], [], []>} : vector<2x32xf32>, vector<32x32xf32>, vector<2x32xf32> -> vector<2x32xf32>
    %36 = arith.addf %34, %35 : vector<2x32xf32>
    %37 = math.tanh %36 : vector<2x32xf32>
    %c10 = arith.constant 10 : index
    %c0_18 = arith.constant 0 : index
    %38 = vector.load %arg6[%c10, %c0_18] : memref<16x32xf32, #tpu.memory_space<vmem>>, vector<2x32xf32>
    tpu.vector_store %arg6[%c10, %c0_18], %37 {strides = array<i32>} : memref<16x32xf32, #tpu.memory_space<vmem>>, vector<2x32xf32>,
    %39 = vector.extract_strided_slice %7 {offsets = [12, 0], sizes = [2, 32], strides = [1, 1]} : vector<16x32xf32> to vector<2x32xf32>
    %cst_19 = arith.constant dense<0.000000e+00> : vector<2x32xf32>
    %40 = tpu.matmul %37, %3, %cst_19 {dimension_numbers = #tpu.dot_dimension_numbers<[1], [0], [0], [1], [0, 0, 1, 1], [], []>} : vector<2x32xf32>, vector<32x32xf32>, vector<2x32xf32> -> vector<2x32xf32>
    %41 = arith.addf %39, %40 : vector<2x32xf32>
    %42 = math.tanh %41 : vector<2x32xf32>
    %c12 = arith.constant 12 : index
    %c0_20 = arith.constant 0 : index
    %43 = vector.load %arg6[%c12, %c0_20] : memref<16x32xf32, #tpu.memory_space<vmem>>, vector<2x32xf32>
    tpu.vector_store %arg6[%c12, %c0_20], %42 {strides = array<i32>} : memref<16x32xf32, #tpu.memory_space<vmem>>, vector<2x32xf32>,
    %44 = vector.extract_strided_slice %7 {offsets = [14, 0], sizes = [2, 32], strides = [1, 1]} : vector<16x32xf32> to vector<2x32xf32>
    %cst_21 = arith.constant dense<0.000000e+00> : vector<2x32xf32>
    %45 = tpu.matmul %42, %3, %cst_21 {dimension_numbers = #tpu.dot_dimension_numbers<[1], [0], [0], [1], [0, 0, 1, 1], [], []>} : vector<2x32xf32>, vector<32x32xf32>, vector<2x32xf32> -> vector<2x32xf32>
    %46 = arith.addf %44, %45 : vector<2x32xf32>
    %47 = math.tanh %46 : vector<2x32xf32>
    %c14 = arith.constant 14 : index
    %c0_22 = arith.constant 0 : index
    %48 = vector.load %arg6[%c14, %c0_22] : memref<16x32xf32, #tpu.memory_space<vmem>>, vector<2x32xf32>
    tpu.vector_store %arg6[%c14, %c0_22], %47 {strides = array<i32>} : memref<16x32xf32, #tpu.memory_space<vmem>>, vector<2x32xf32>,
    %c0_23 = arith.constant 0 : index
    %c0_24 = arith.constant 0 : index
    %c0_25 = arith.constant 0 : index
    %49 = vector.load %arg5[%c0_23, %c0_24, %c0_25] : memref<2x2x32xf32, #tpu.memory_space<vmem>>, vector<1x2x32xf32>
    %50 = vector.shape_cast %49 : vector<1x2x32xf32> to vector<2x32xf32>
    %51 = vector.shape_cast %47 : vector<2x32xf32> to vector<1x2x32xf32>
    tpu.vector_store %arg5[%c0_23, %c0_24, %c0_25], %51 {strides = array<i32>} : memref<2x2x32xf32, #tpu.memory_space<vmem>>, vector<1x2x32xf32>,
    %c0_26 = arith.constant 0 : index
    %c0_27 = arith.constant 0 : index
    %52 = vector.load %arg6[%c0_26, %c0_27] : memref<16x32xf32, #tpu.memory_space<vmem>>, vector<16x32xf32>
    %c16 = arith.constant 16 : index
    %c0_28 = arith.constant 0 : index
    %53 = vector.load %arg2[%c16, %c0_28] : memref<114x32xf32, #tpu.memory_space<vmem>>, vector<32x32xf32>
    %c80 = arith.constant 80 : index
    %c0_29 = arith.constant 0 : index
    %54 = vector.load %arg2[%c80, %c0_29] : memref<114x32xf32, #tpu.memory_space<vmem>>, vector<32x32xf32>
    %cst_30 = arith.constant dense<0.000000e+00> : vector<16x32xf32>
    %55 = tpu.matmul %52, %53, %cst_30 {dimension_numbers = #tpu.dot_dimension_numbers<[1], [0], [0], [1], [0, 0, 1, 1], [], []>} : vector<16x32xf32>, vector<32x32xf32>, vector<16x32xf32> -> vector<16x32xf32>
    %56 = vector.extract_strided_slice %0 {offsets = [1, 0], sizes = [1, 32], strides = [1, 1]} : vector<2x32xf32> to vector<1x32xf32>
    %57 = vector.broadcast %56 : vector<1x32xf32> to vector<16x32xf32>
    %58 = arith.addf %55, %57 : vector<16x32xf32>
    %cst_31 = arith.constant 0.000000e+00 : f32
    %59 = vector.broadcast %cst_31 : f32 to vector<2x32xf32>
    %60 = vector.extract_strided_slice %58 {offsets = [0, 0], sizes = [2, 32], strides = [1, 1]} : vector<16x32xf32> to vector<2x32xf32>
    %cst_32 = arith.constant dense<0.000000e+00> : vector<2x32xf32>
    %61 = tpu.matmul %59, %54, %cst_32 {dimension_numbers = #tpu.dot_dimension_numbers<[1], [0], [0], [1], [0, 0, 1, 1], [], []>} : vector<2x32xf32>, vector<32x32xf32>, vector<2x32xf32> -> vector<2x32xf32>
    %62 = arith.addf %60, %61 : vector<2x32xf32>
    %63 = math.tanh %62 : vector<2x32xf32>
    %64 = vector.extract_strided_slice %63 {offsets = [0, 0], sizes = [1, 32], strides = [1, 1]} : vector<2x32xf32> to vector<1x32xf32>
    %c0_33 = arith.constant 0 : index
    %c0_34 = arith.constant 0 : index
    %65 = vector.load %arg7[%c0_33, %c0_34] : memref<16x32xf32, #tpu.memory_space<vmem>>, vector<1x32xf32>
    tpu.vector_store %arg7[%c0_33, %c0_34], %64 {strides = array<i32>} : memref<16x32xf32, #tpu.memory_space<vmem>>, vector<1x32xf32>,
    %66 = vector.extract_strided_slice %63 {offsets = [1, 0], sizes = [1, 32], strides = [1, 1]} : vector<2x32xf32> to vector<1x32xf32>
    %c8_35 = arith.constant 8 : index
    %c0_36 = arith.constant 0 : index
    %67 = vector.load %arg7[%c8_35, %c0_36] : memref<16x32xf32, #tpu.memory_space<vmem>>, vector<1x32xf32>
    tpu.vector_store %arg7[%c8_35, %c0_36], %66 {strides = array<i32>} : memref<16x32xf32, #tpu.memory_space<vmem>>, vector<1x32xf32>,
    %68 = vector.extract_strided_slice %58 {offsets = [2, 0], sizes = [2, 32], strides = [1, 1]} : vector<16x32xf32> to vector<2x32xf32>
    %cst_37 = arith.constant dense<0.000000e+00> : vector<2x32xf32>
    %69 = tpu.matmul %63, %54, %cst_37 {dimension_numbers = #tpu.dot_dimension_numbers<[1], [0], [0], [1], [0, 0, 1, 1], [], []>} : vector<2x32xf32>, vector<32x32xf32>, vector<2x32xf32> -> vector<2x32xf32>
    %70 = arith.addf %68, %69 : vector<2x32xf32>
    %71 = math.tanh %70 : vector<2x32xf32>
    %72 = vector.extract_strided_slice %71 {offsets = [0, 0], sizes = [1, 32], strides = [1, 1]} : vector<2x32xf32> to vector<1x32xf32>
    %c1 = arith.constant 1 : index
    %c0_38 = arith.constant 0 : index
    %73 = vector.load %arg7[%c1, %c0_38] : memref<16x32xf32, #tpu.memory_space<vmem>>, vector<1x32xf32>
    tpu.vector_store %arg7[%c1, %c0_38], %72 {strides = array<i32>} : memref<16x32xf32, #tpu.memory_space<vmem>>, vector<1x32xf32>,
    %74 = vector.extract_strided_slice %71 {offsets = [1, 0], sizes = [1, 32], strides = [1, 1]} : vector<2x32xf32> to vector<1x32xf32>
    %c9 = arith.constant 9 : index
    %c0_39 = arith.constant 0 : index
    %75 = vector.load %arg7[%c9, %c0_39] : memref<16x32xf32, #tpu.memory_space<vmem>>, vector<1x32xf32>
    tpu.vector_store %arg7[%c9, %c0_39], %74 {strides = array<i32>} : memref<16x32xf32, #tpu.memory_space<vmem>>, vector<1x32xf32>,
    %76 = vector.extract_strided_slice %58 {offsets = [4, 0], sizes = [2, 32], strides = [1, 1]} : vector<16x32xf32> to vector<2x32xf32>
    %cst_40 = arith.constant dense<0.000000e+00> : vector<2x32xf32>
    %77 = tpu.matmul %71, %54, %cst_40 {dimension_numbers = #tpu.dot_dimension_numbers<[1], [0], [0], [1], [0, 0, 1, 1], [], []>} : vector<2x32xf32>, vector<32x32xf32>, vector<2x32xf32> -> vector<2x32xf32>
    %78 = arith.addf %76, %77 : vector<2x32xf32>
    %79 = math.tanh %78 : vector<2x32xf32>
    %80 = vector.extract_strided_slice %79 {offsets = [0, 0], sizes = [1, 32], strides = [1, 1]} : vector<2x32xf32> to vector<1x32xf32>
    %c2_41 = arith.constant 2 : index
    %c0_42 = arith.constant 0 : index
    %81 = vector.load %arg7[%c2_41, %c0_42] : memref<16x32xf32, #tpu.memory_space<vmem>>, vector<1x32xf32>
    tpu.vector_store %arg7[%c2_41, %c0_42], %80 {strides = array<i32>} : memref<16x32xf32, #tpu.memory_space<vmem>>, vector<1x32xf32>,
    %82 = vector.extract_strided_slice %79 {offsets = [1, 0], sizes = [1, 32], strides = [1, 1]} : vector<2x32xf32> to vector<1x32xf32>
    %c10_43 = arith.constant 10 : index
    %c0_44 = arith.constant 0 : index
    %83 = vector.load %arg7[%c10_43, %c0_44] : memref<16x32xf32, #tpu.memory_space<vmem>>, vector<1x32xf32>
    tpu.vector_store %arg7[%c10_43, %c0_44], %82 {strides = array<i32>} : memref<16x32xf32, #tpu.memory_space<vmem>>, vector<1x32xf32>,
    %84 = vector.extract_strided_slice %58 {offsets = [6, 0], sizes = [2, 32], strides = [1, 1]} : vector<16x32xf32> to vector<2x32xf32>
    %cst_45 = arith.constant dense<0.000000e+00> : vector<2x32xf32>
    %85 = tpu.matmul %79, %54, %cst_45 {dimension_numbers = #tpu.dot_dimension_numbers<[1], [0], [0], [1], [0, 0, 1, 1], [], []>} : vector<2x32xf32>, vector<32x32xf32>, vector<2x32xf32> -> vector<2x32xf32>
    %86 = arith.addf %84, %85 : vector<2x32xf32>
    %87 = math.tanh %86 : vector<2x32xf32>
    %88 = vector.extract_strided_slice %87 {offsets = [0, 0], sizes = [1, 32], strides = [1, 1]} : vector<2x32xf32> to vector<1x32xf32>
    %c3 = arith.constant 3 : index
    %c0_46 = arith.constant 0 : index
    %89 = vector.load %arg7[%c3, %c0_46] : memref<16x32xf32, #tpu.memory_space<vmem>>, vector<1x32xf32>
    tpu.vector_store %arg7[%c3, %c0_46], %88 {strides = array<i32>} : memref<16x32xf32, #tpu.memory_space<vmem>>, vector<1x32xf32>,
    %90 = vector.extract_strided_slice %87 {offsets = [1, 0], sizes = [1, 32], strides = [1, 1]} : vector<2x32xf32> to vector<1x32xf32>
    %c11 = arith.constant 11 : index
    %c0_47 = arith.constant 0 : index
    %91 = vector.load %arg7[%c11, %c0_47] : memref<16x32xf32, #tpu.memory_space<vmem>>, vector<1x32xf32>
    tpu.vector_store %arg7[%c11, %c0_47], %90 {strides = array<i32>} : memref<16x32xf32, #tpu.memory_space<vmem>>, vector<1x32xf32>,
    %92 = vector.extract_strided_slice %58 {offsets = [8, 0], sizes = [2, 32], strides = [1, 1]} : vector<16x32xf32> to vector<2x32xf32>
    %cst_48 = arith.constant dense<0.000000e+00> : vector<2x32xf32>
    %93 = tpu.matmul %87, %54, %cst_48 {dimension_numbers = #tpu.dot_dimension_numbers<[1], [0], [0], [1], [0, 0, 1, 1], [], []>} : vector<2x32xf32>, vector<32x32xf32>, vector<2x32xf32> -> vector<2x32xf32>
    %94 = arith.addf %92, %93 : vector<2x32xf32>
    %95 = math.tanh %94 : vector<2x32xf32>
    %96 = vector.extract_strided_slice %95 {offsets = [0, 0], sizes = [1, 32], strides = [1, 1]} : vector<2x32xf32> to vector<1x32xf32>
    %c4_49 = arith.constant 4 : index
    %c0_50 = arith.constant 0 : index
    %97 = vector.load %arg7[%c4_49, %c0_50] : memref<16x32xf32, #tpu.memory_space<vmem>>, vector<1x32xf32>
    tpu.vector_store %arg7[%c4_49, %c0_50], %96 {strides = array<i32>} : memref<16x32xf32, #tpu.memory_space<vmem>>, vector<1x32xf32>,
    %98 = vector.extract_strided_slice %95 {offsets = [1, 0], sizes = [1, 32], strides = [1, 1]} : vector<2x32xf32> to vector<1x32xf32>
    %c12_51 = arith.constant 12 : index
    %c0_52 = arith.constant 0 : index
    %99 = vector.load %arg7[%c12_51, %c0_52] : memref<16x32xf32, #tpu.memory_space<vmem>>, vector<1x32xf32>
    tpu.vector_store %arg7[%c12_51, %c0_52], %98 {strides = array<i32>} : memref<16x32xf32, #tpu.memory_space<vmem>>, vector<1x32xf32>,
    %100 = vector.extract_strided_slice %58 {offsets = [10, 0], sizes = [2, 32], strides = [1, 1]} : vector<16x32xf32> to vector<2x32xf32>
    %cst_53 = arith.constant dense<0.000000e+00> : vector<2x32xf32>
    %101 = tpu.matmul %95, %54, %cst_53 {dimension_numbers = #tpu.dot_dimension_numbers<[1], [0], [0], [1], [0, 0, 1, 1], [], []>} : vector<2x32xf32>, vector<32x32xf32>, vector<2x32xf32> -> vector<2x32xf32>
    %102 = arith.addf %100, %101 : vector<2x32xf32>
    %103 = math.tanh %102 : vector<2x32xf32>
    %104 = vector.extract_strided_slice %103 {offsets = [0, 0], sizes = [1, 32], strides = [1, 1]} : vector<2x32xf32> to vector<1x32xf32>
    %c5 = arith.constant 5 : index
    %c0_54 = arith.constant 0 : index
    %105 = vector.load %arg7[%c5, %c0_54] : memref<16x32xf32, #tpu.memory_space<vmem>>, vector<1x32xf32>
    tpu.vector_store %arg7[%c5, %c0_54], %104 {strides = array<i32>} : memref<16x32xf32, #tpu.memory_space<vmem>>, vector<1x32xf32>,
    %106 = vector.extract_strided_slice %103 {offsets = [1, 0], sizes = [1, 32], strides = [1, 1]} : vector<2x32xf32> to vector<1x32xf32>
    %c13 = arith.constant 13 : index
    %c0_55 = arith.constant 0 : index
    %107 = vector.load %arg7[%c13, %c0_55] : memref<16x32xf32, #tpu.memory_space<vmem>>, vector<1x32xf32>
    tpu.vector_store %arg7[%c13, %c0_55], %106 {strides = array<i32>} : memref<16x32xf32, #tpu.memory_space<vmem>>, vector<1x32xf32>,
    %108 = vector.extract_strided_slice %58 {offsets = [12, 0], sizes = [2, 32], strides = [1, 1]} : vector<16x32xf32> to vector<2x32xf32>
    %cst_56 = arith.constant dense<0.000000e+00> : vector<2x32xf32>
    %109 = tpu.matmul %103, %54, %cst_56 {dimension_numbers = #tpu.dot_dimension_numbers<[1], [0], [0], [1], [0, 0, 1, 1], [], []>} : vector<2x32xf32>, vector<32x32xf32>, vector<2x32xf32> -> vector<2x32xf32>
    %110 = arith.addf %108, %109 : vector<2x32xf32>
    %111 = math.tanh %110 : vector<2x32xf32>
    %112 = vector.extract_strided_slice %111 {offsets = [0, 0], sizes = [1, 32], strides = [1, 1]} : vector<2x32xf32> to vector<1x32xf32>
    %c6_57 = arith.constant 6 : index
    %c0_58 = arith.constant 0 : index
    %113 = vector.load %arg7[%c6_57, %c0_58] : memref<16x32xf32, #tpu.memory_space<vmem>>, vector<1x32xf32>
    tpu.vector_store %arg7[%c6_57, %c0_58], %112 {strides = array<i32>} : memref<16x32xf32, #tpu.memory_space<vmem>>, vector<1x32xf32>,
    %114 = vector.extract_strided_slice %111 {offsets = [1, 0], sizes = [1, 32], strides = [1, 1]} : vector<2x32xf32> to vector<1x32xf32>
    %c14_59 = arith.constant 14 : index
    %c0_60 = arith.constant 0 : index
    %115 = vector.load %arg7[%c14_59, %c0_60] : memref<16x32xf32, #tpu.memory_space<vmem>>, vector<1x32xf32>
    tpu.vector_store %arg7[%c14_59, %c0_60], %114 {strides = array<i32>} : memref<16x32xf32, #tpu.memory_space<vmem>>, vector<1x32xf32>,
    %116 = vector.extract_strided_slice %58 {offsets = [14, 0], sizes = [2, 32], strides = [1, 1]} : vector<16x32xf32> to vector<2x32xf32>
    %cst_61 = arith.constant dense<0.000000e+00> : vector<2x32xf32>
    %117 = tpu.matmul %111, %54, %cst_61 {dimension_numbers = #tpu.dot_dimension_numbers<[1], [0], [0], [1], [0, 0, 1, 1], [], []>} : vector<2x32xf32>, vector<32x32xf32>, vector<2x32xf32> -> vector<2x32xf32>
    %118 = arith.addf %116, %117 : vector<2x32xf32>
    %119 = math.tanh %118 : vector<2x32xf32>
    %120 = vector.extract_strided_slice %119 {offsets = [0, 0], sizes = [1, 32], strides = [1, 1]} : vector<2x32xf32> to vector<1x32xf32>
    %c7 = arith.constant 7 : index
    %c0_62 = arith.constant 0 : index
    %121 = vector.load %arg7[%c7, %c0_62] : memref<16x32xf32, #tpu.memory_space<vmem>>, vector<1x32xf32>
    tpu.vector_store %arg7[%c7, %c0_62], %120 {strides = array<i32>} : memref<16x32xf32, #tpu.memory_space<vmem>>, vector<1x32xf32>,
    %122 = vector.extract_strided_slice %119 {offsets = [1, 0], sizes = [1, 32], strides = [1, 1]} : vector<2x32xf32> to vector<1x32xf32>
    %c15 = arith.constant 15 : index
    %c0_63 = arith.constant 0 : index
    %123 = vector.load %arg7[%c15, %c0_63] : memref<16x32xf32, #tpu.memory_space<vmem>>, vector<1x32xf32>
    tpu.vector_store %arg7[%c15, %c0_63], %122 {strides = array<i32>} : memref<16x32xf32, #tpu.memory_space<vmem>>, vector<1x32xf32>,
    %c1_64 = arith.constant 1 : index
    %c0_65 = arith.constant 0 : index
    %c0_66 = arith.constant 0 : index
    %124 = vector.load %arg5[%c1_64, %c0_65, %c0_66] : memref<2x2x32xf32, #tpu.memory_space<vmem>>, vector<1x2x32xf32>
    %125 = vector.shape_cast %124 : vector<1x2x32xf32> to vector<2x32xf32>
    %126 = vector.shape_cast %119 : vector<2x32xf32> to vector<1x2x32xf32>
    tpu.vector_store %arg5[%c1_64, %c0_65, %c0_66], %126 {strides = array<i32>} : memref<2x2x32xf32, #tpu.memory_space<vmem>>, vector<1x2x32xf32>,
    %c0_67 = arith.constant 0 : index
    %c0_68 = arith.constant 0 : index
    %127 = vector.load %arg3[%c0_67, %c0_68] : memref<33x16xf32, #tpu.memory_space<vmem>>, vector<32x16xf32>
    %c32 = arith.constant 32 : index
    %c0_69 = arith.constant 0 : index
    %128 = vector.load %arg3[%c32, %c0_69] : memref<33x16xf32, #tpu.memory_space<vmem>>, vector<1x16xf32>
    %c0_70 = arith.constant 0 : index
    %c0_71 = arith.constant 0 : index
    %129 = vector.load %arg7[%c0_70, %c0_71] : memref<16x32xf32, #tpu.memory_space<vmem>>, vector<16x32xf32>
    %cst_72 = arith.constant dense<0.000000e+00> : vector<16x16xf32>
    %130 = tpu.matmul %129, %127, %cst_72 {dimension_numbers = #tpu.dot_dimension_numbers<[1], [0], [0], [1], [0, 0, 1, 1], [], []>} : vector<16x32xf32>, vector<32x16xf32>, vector<16x16xf32> -> vector<16x16xf32>
    %131 = vector.broadcast %128 : vector<1x16xf32> to vector<16x16xf32>
    %132 = arith.addf %130, %131 : vector<16x16xf32>
    %c0_73 = arith.constant 0 : index
    %c0_74 = arith.constant 0 : index
    %133 = vector.load %arg4[%c0_73, %c0_74] : memref<16x16xf32, #tpu.memory_space<vmem>>, vector<16x16xf32>
    tpu.vector_store %arg4[%c0_73, %c0_74], %132 {strides = array<i32>} : memref<16x16xf32, #tpu.memory_space<vmem>>, vector<16x16xf32>,
    return
  }
  func.func @transform_0(%arg0: i32) -> (i32, i32) {
    %c0_i32 = arith.constant 0 : i32
    %c0_i32_0 = arith.constant 0 : i32
    %c0_i32_1 = arith.constant 0 : i32
    return %c0_i32, %c0_i32_0 : i32, i32
  }
  func.func @transform_1(%arg0: i32) -> (i32, i32) {
    %c0_i32 = arith.constant 0 : i32
    %c0_i32_0 = arith.constant 0 : i32
    %c0_i32_1 = arith.constant 0 : i32
    return %c0_i32, %c0_i32_0 : i32, i32
  }
  func.func @transform_2(%arg0: i32) -> (i32, i32) {
    %c0_i32 = arith.constant 0 : i32
    %c0_i32_0 = arith.constant 0 : i32
    %c0_i32_1 = arith.constant 0 : i32
    return %c0_i32, %c0_i32_0 : i32, i32
  }
  func.func @transform_3(%arg0: i32) -> (i32, i32) {
    %c0_i32 = arith.constant 0 : i32
    %c0_i32_0 = arith.constant 0 : i32
    %c0_i32_1 = arith.constant 0 : i32
    return %c0_i32, %c0_i32_0 : i32, i32
  }
  func.func @transform_4(%arg0: i32) -> (i32, i32, i32) {
    %c0_i32 = arith.constant 0 : i32
    %c0_i32_0 = arith.constant 0 : i32
    %c0_i32_1 = arith.constant 0 : i32
    %c0_i32_2 = arith.constant 0 : i32
    return %c0_i32, %c0_i32_0, %c0_i32_1 : i32, i32, i32
  }
}

</mosaic_0001>

<bundles_post_ra>
// kernel: rnn_forward.1
= control target key start
LH: loop header
LB: loop body
LE: loop exit
PB: predicated region body
PF: predicated region fallthrough
CT: control target
= control target key end

     0   :  { %10 = vsyncpa [#allocation5], 0  ;;  %vm31_vm0 = vcmask 130048   ;;  %v2144_v3 = vmov 0.0|0.0   ;;  %vm2145_vm1 = vmmov 0   ;;  %v2146_v10 = vmov 0.0   ;;  %s2442_s0 = inlined_call_operand.vmem [shape: f32[16,16], index: 0, kind: input, shape index: {}]   ;;  %s2443_s1 = inlined_call_operand.vmem [shape: f32[114,32], index: 1, kind: input, shape index: {}]   ;;  %s2444_s2 = inlined_call_operand.vmem [shape: f32[33,16], index: 2, kind: input, shape index: {}]   ;;  %s2445_s3 = inlined_call_operand.hbm [shape: f32[16,16], index: 3, kind: output, shape index: {0}]   ;;  %s2446_s4 = inlined_call_operand.hbm [shape: f32[2,2,32], index: 4, kind: output, shape index: {1}]  }
   0x1   :  { %v21_v0 = vld [vmem:[%s2443_s1] sm:$0xff]  ;;  %v22_v1 = vld [vmem:[%s2443_s1 + $0x8] sm:$0xff]  ;;  %v23_v2 = vld [vmem:[%s2443_s1 + $0x30] sm:$0xff]  ;;  %1943 = vmatprep.subr.bf16.mxu1 %v2144_v3  ;;  %1749 = vmatprep.mubr.msk.f32.mxu1 %vm2145_vm1, %v2146_v10 }
   0x2   :  { %v1939_v4 = vpack.c.bf16 %v22_v1, %v21_v0  ;;  %v24_v5 = vld [vmem:[%s2443_s1 + $0x38] sm:$0xff]  ;;  %v19_v6 = vld [vmem:[%s2442_s0] sm:$0xff]  ;;  %v26_v9 = vld [vmem:[%s2443_s1 + $0x48] sm:$0xff] }
   0x3   :  { %v2194_v7 = vpack.c.bf16 %v24_v5, %v23_v2  ;;  %1738 = vmatprep.mubr.msk.f32.mxu0 %vm31_vm0, %v19_v6  ;;  %v25_v8 = vld [vmem:[%s2443_s1 + $0x40] sm:$0xff] }
   0x4   :  { %1940 = vmatprep.subr.bf16.mxu0 %v1939_v4 }
   0x5   :  { %11 = vsyncpa [#allocation7], 0  ;;  %1945 = vmatpush3.bf16.msra.mxu1 %v2194_v7  ;;  %1942 = vmatpush3.bf16.msra.mxu0 %v1939_v4  ;;  %v20_v11 = vld [vmem:[%s2442_s0 + $0x8] sm:$0xff]  ;;  %v2209_v12 = vpack.c.bf16 %v26_v9, %v25_v8  ;;  %v27_v13 = vlaneseq  ;;  %v2235_v16 = vld [vmem:[%s2443_s1 + $0x70] sm:$0x3]  ;;  %vm189_vm2 = vcmask 254976  }
   0x6   :  { %1946 = vmatprep.subr.bf16.mxu1 %v2144_v3  ;;  %1949 = vmatprep.subr.bf16.mxu0 %v2144_v3  ;;  %vm113_vm3 = vcmask 261120   ;;  %vm269_vm4 = vcmask 257026   ;;  %vm350_vm5 = vcmask 259076   ;;  %vm431_vm6 = vcmask 261126   ;;  %v752_v61 = vld [vmem:[%s2443_s1 + $0x10] sm:$0xff]  ;;  %v753_v62 = vld [vmem:[%s2443_s1 + $0x18] sm:$0xff] }
   0x7   :  { %v2229_v14 = vshrl.u32 %v27_v13, 7  ;;  %v1991_v63 = vpack.c.bf16 %v753_v62, %v752_v61  ;;  %v756_v0 = vld [vmem:[%s2443_s1 + $0x50] sm:$0xff]  ;;  %v757_v1 = vld [vmem:[%s2443_s1 + $0x58] sm:$0xff]  ;;  %v754_v2 = vld [vmem:[%s2443_s1 + $0x20] sm:$0xff]  ;;  %vm917_vm7 = vcmask 253952   ;;  %vm919_vm8 = vcmask 254977  }
   0x8   :  { %1739 = vmatmul.mubr.msk.f32.vlgmr.msra.gmra.mrb[0].mxu0 %vm31_vm0, %v20_v11  ;;  %v2304_v4 = vpack.c.bf16 %v757_v1, %v756_v0  ;;  %v755_v5 = vld [vmem:[%s2443_s1 + $0x28] sm:$0xff]  ;;  %v758_v6 = vld [vmem:[%s2443_s1 + $0x60] sm:$0xff]  ;;  %vm999_vm9 = vcmask 256002   ;;  %vm1001_vm10 = vcmask 257027   ;;  %vm1082_vm11 = vcmask 258052   ;;  %v1493_v62 = vld [vmem:[%s2444_s2 + $0x10] sm:$0xff] }
   0x9   :  { %1948 = vmatpush3.bf16.msra.mxu1 %v2209_v12  ;;  %1951 = vmatpush3.bf16.msra.mxu0 %v2194_v7  ;;  %v29_v15 = vsub.s32 0, %v2229_v14  ;;  %v1995_v8 = vpack.c.bf16 %v755_v5, %v754_v2  ;;  %vm1084_vm12 = vcmask 259077   ;;  %vm1165_vm13 = vcmask 260102   ;;  %s2147_s29 = smov [#allocation6]  }
   0xa   :  { %1952 = vmatprep.subr.bf16.mxu0 %v2144_v3  ;;  %1760 = vmatprep.mubr.msk.f32.mxu0 %vm2145_vm1, %v2146_v10  ;;  %vm1167_vm14 = vcmask 261127   ;;  %s1602_s30 = sshll.u32 %s2147_s29, 4  ;;  %s1603_s30 = int_to_ptr.vmem [resolvable:$true] %s1602_s30 }
   0xb   :  { %1955 = vmatprep.subr.bf16.mxu1 %v2144_v3  ;;  %v30_v17 = vrot.slane %v2235_v16, %v29_v15  ;;  %s2096_s0 = scalar_lea.vmem %s1603_s30, 64  ;;  %p2101_p1 = scmp.lt.s32.totalorder %s1603_s30, %s1603_s30 }
   0xc   :  { %1750 = vmatmul.mubr.f32.vlgmr.msra.gmra.mrb[0].mxu1 %v2146_v10  ;;  %p2097_p0 = scmp.ne.s32.totalorder %s1603_s30, %s2096_s0  ;;  %p2102_p2 = scmp.lt.s32.totalorder %s2096_s0, %s2096_s0 }
   0xd   :  { %1954 = vmatpush3.bf16.msra.mxu0 %v2209_v12  ;;  %1957 = vmatpush3.bf16.msra.mxu1 %v2194_v7 }
   0xe   :  { %1958 = vmatprep.subr.bf16.mxu1 %v2144_v3  ;;  %1771 = vmatprep.mubr.msk.f32.mxu1 %vm2145_vm1, %v2146_v10  ;;  %p2103_p3 = por %p2102_p2, %p2101_p1 }
   0xf   :  { %1961 = vmatprep.subr.bf16.mxu0 %v2144_v3 }
  0x10   :  { %p2104_p4 = pnand %p2103_p3, %p2097_p0 }
  0x11   :  { %1960 = vmatpush3.bf16.msra.mxu1 %v2209_v12 }
  0x12   :  { %1967 = vmatprep.subr.bf16.mxu1 %v2144_v3 }
  0xdb   :  { %v1740_v18 = vpop.f32.mrb[0].mxu0 }
  0xdc   :  { %v2238_v19 = vadd.f32 %v1740_v18, %v30_v17  ;;  %v104_v20 = vpop.f32.mrb[1].mxu0 }
  0xdd   :  { %v105_v21 = vadd.f32 %v104_v20, %v30_v17 }
  0xdf   :  { %v183_v22 = vpop.f32.mrb[0].mxu1 }
  0xe0   :  { %v187_v23 = vadd.f32 %v183_v22, %v105_v21  ;;  %v1751_v24 = vpop.f32.mrb[1].mxu1 }
  0xe2   :  { %2064 = vtanh.f32 %v187_v23 }
  0xec   :  { %v2065_v25 = vpop.eup %2064 }
  0xed   :  { %190 = vst.msk [vmem:[#allocation2] sm:$0x3] %vm189_vm2, %v2065_v25  ;;  %1761 = vmatmul.mubr.msk.f32.vlgmr.msra.gmra.mrb[2].mxu0 %vm113_vm3, %v2065_v25 }
  0xee   :  { %1963 = vmatpush3.bf16.msra.mxu0 %v2194_v7  ;;  %1782 = vmatprep.mubr.msk.f32.mxu0 %vm2145_vm1, %v2146_v10 }
  0xef   :  { %1964 = vmatprep.subr.bf16.mxu0 %v2144_v3 }
  0xf2   :  { %1966 = vmatpush3.bf16.msra.mxu0 %v2209_v12 }
  0xf3   :  { %1973 = vmatprep.subr.bf16.mxu0 %v2144_v3 }
 0x1c0   :  { %v260_v26 = vpop.f32.mrb[2].mxu0 }
 0x1c1   :  { %v265_v27 = vrot.slane %v260_v26, 6  ;;  %v1762_v28 = vpop.f32.mrb[3].mxu0 }
 0x1c3   :  { %v267_v29 = vadd.f32 %v265_v27, %v105_v21 }
 0x1c5   :  { %2066 = vtanh.f32 %v267_v29 }
 0x1cf   :  { %v2067_v30 = vpop.eup %2066 }
 0x1d0   :  { %270 = vst.msk [vmem:[#allocation2] sm:$0xc] %vm269_vm4, %v2067_v30  ;;  %v272_v31 = vrot.slane %v2067_v30, 2 }
 0x1d2   :  { %1772 = vmatmul.mubr.msk.f32.vlgmr.msra.gmra.mrb[2].mxu1 %vm113_vm3, %v272_v31 }
 0x1d3   :  { %1969 = vmatpush3.bf16.msra.mxu1 %v2194_v7  ;;  %1793 = vmatprep.mubr.msk.f32.mxu1 %vm2145_vm1, %v2146_v10 }
 0x1d4   :  { %1970 = vmatprep.subr.bf16.mxu1 %v2144_v3 }
 0x1d7   :  { %1972 = vmatpush3.bf16.msra.mxu1 %v2209_v12 }
 0x1d8   :  { %1979 = vmatprep.subr.bf16.mxu1 %v2144_v3 }
 0x2a5   :  { %v341_v32 = vpop.f32.mrb[2].mxu1 }
 0x2a6   :  { %v346_v33 = vrot.slane %v341_v32, 4  ;;  %v1773_v34 = vpop.f32.mrb[3].mxu1 }
 0x2a8   :  { %v348_v35 = vadd.f32 %v346_v33, %v105_v21 }
 0x2aa   :  { %2068 = vtanh.f32 %v348_v35 }
 0x2b4   :  { %v2069_v36 = vpop.eup %2068 }
 0x2b5   :  { %351 = vst.msk [vmem:[#allocation2] sm:$0x30] %vm350_vm5, %v2069_v36  ;;  %v353_v37 = vrot.slane %v2069_v36, 4 }
 0x2b7   :  { %1783 = vmatmul.mubr.msk.f32.vlgmr.msra.gmra.mrb[4].mxu0 %vm113_vm3, %v353_v37 }
 0x2b8   :  { %1975 = vmatpush3.bf16.msra.mxu0 %v2194_v7  ;;  %1804 = vmatprep.mubr.msk.f32.mxu0 %vm2145_vm1, %v2146_v10 }
 0x2b9   :  { %1976 = vmatprep.subr.bf16.mxu0 %v2144_v3 }
 0x2bc   :  { %1978 = vmatpush3.bf16.msra.mxu0 %v2209_v12 }
 0x2bd   :  { %1985 = vmatprep.subr.bf16.mxu0 %v2144_v3 }
 0x38a   :  { %v422_v38 = vpop.f32.mrb[4].mxu0 }
 0x38b   :  { %v427_v39 = vrot.slane %v422_v38, 2  ;;  %v1784_v40 = vpop.f32.mrb[5].mxu0 }
 0x38d   :  { %v429_v41 = vadd.f32 %v427_v39, %v105_v21  ;;  %v762_v21 = vsub.s32 1, %v2229_v14 }
 0x38f   :  { %2070 = vtanh.f32 %v429_v41  ;;  %v763_v22 = vrot.slane %v2235_v16, %v762_v21 }
 0x399   :  { %v2071_v42 = vpop.eup %2070 }
 0x39a   :  { %432 = vst.msk [vmem:[#allocation2] sm:$0xc0] %vm431_vm6, %v2071_v42  ;;  %v434_v43 = vrot.slane %v2071_v42, 6 }
 0x39c   :  { %1794 = vmatmul.mubr.msk.f32.vlgmr.msra.gmra.mrb[4].mxu1 %vm113_vm3, %v434_v43 }
 0x39d   :  { %1981 = vmatpush3.bf16.msra.mxu1 %v2194_v7  ;;  %1815 = vmatprep.mubr.msk.f32.mxu1 %vm2145_vm1, %v2146_v10 }
 0x39e   :  { %1982 = vmatprep.subr.bf16.mxu1 %v2144_v3 }
 0x3a1   :  { %1984 = vmatpush3.bf16.msra.mxu1 %v2209_v12  ;;  %v750_v54 = vld [vmem:[#allocation2] sm:$0xff] }
 0x3a2   :  { %1992 = vmatprep.subr.bf16.mxu1 %v1991_v63 }
 0x46f   :  { %v503_v44 = vpop.f32.mrb[4].mxu1 }
 0x470   :  { %v507_v45 = vadd.f32 %v503_v44, %v2238_v19  ;;  %v1795_v46 = vpop.f32.mrb[5].mxu1 }
 0x472   :  { %2072 = vtanh.f32 %v507_v45 }
 0x47c   :  { %v2073_v47 = vpop.eup %2072 }
 0x47d   :  { %509 = vst.msk [vmem:[#allocation2 + $0x8] sm:$0x3] %vm189_vm2, %v2073_v47  ;;  %1805 = vmatmul.mubr.msk.f32.vlgmr.msra.gmra.mrb[6].mxu0 %vm113_vm3, %v2073_v47 }
 0x47e   :  { %1987 = vmatpush3.bf16.msra.mxu0 %v2194_v7  ;;  %1826 = vmatprep.mubr.msk.f32.mxu0 %vm2145_vm1, %v2146_v10  ;;  %v759_v7 = vld [vmem:[%s2443_s1 + $0x68] sm:$0xff] }
 0x47f   :  { %1988 = vmatprep.subr.bf16.mxu0 %v2144_v3  ;;  %v2316_v9 = vpack.c.bf16 %v759_v7, %v758_v6 }
 0x482   :  { %1990 = vmatpush3.bf16.msra.mxu0 %v2209_v12 }
 0x483   :  { %1999 = vmatprep.subr.bf16.mxu0 %v2144_v3 }
 0x550   :  { %v579_v48 = vpop.f32.mrb[6].mxu0 }
 0x551   :  { %v584_v49 = vrot.slane %v579_v48, 6  ;;  %v1806_v50 = vpop.f32.mrb[7].mxu0 }
 0x553   :  { %v586_v51 = vadd.f32 %v584_v49, %v2238_v19 }
 0x555   :  { %2074 = vtanh.f32 %v586_v51 }
 0x55f   :  { %v2075_v52 = vpop.eup %2074 }
 0x560   :  { %588 = vst.msk [vmem:[#allocation2 + $0x8] sm:$0xc] %vm269_vm4, %v2075_v52  ;;  %v590_v53 = vrot.slane %v2075_v52, 2 }
 0x562   :  { %1816 = vmatmul.mubr.msk.f32.vlgmr.msra.gmra.mrb[6].mxu1 %vm113_vm3, %v590_v53 }
 0x563   :  { %1837 = vmatprep.mubr.msk.f32.mxu1 %vm113_vm3, %v750_v54  ;;  %1994 = vmatpush3.bf16.msra.mxu1 %v1991_v63  ;;  %v1494_v63 = vld [vmem:[%s2444_s2 + $0x18] sm:$0xff] }
 0x564   :  { %1996 = vmatprep.subr.bf16.mxu1 %v1995_v8  ;;  %v2051_v0 = vpack.c.bf16 %v1494_v63, %v1493_v62 }
 0x567   :  { %1998 = vmatpush3.bf16.msra.mxu1 %v1995_v8 }
 0x568   :  { %2005 = vmatprep.subr.bf16.mxu1 %v2144_v3 }
 0x635   :  { %v659_v55 = vpop.f32.mrb[6].mxu1 }
 0x636   :  { %v664_v56 = vrot.slane %v659_v55, 4  ;;  %v1817_v57 = vpop.f32.mrb[7].mxu1 }
 0x638   :  { %v666_v58 = vadd.f32 %v664_v56, %v2238_v19 }
 0x63a   :  { %2076 = vtanh.f32 %v666_v58 }
 0x644   :  { %v2077_v59 = vpop.eup %2076 }
 0x645   :  { %668 = vst.msk [vmem:[#allocation2 + $0x8] sm:$0x30] %vm350_vm5, %v2077_v59  ;;  %v670_v60 = vrot.slane %v2077_v59, 4  ;;  %v1491_v59 = vld [vmem:[%s2444_s2] sm:$0xff] }
 0x647   :  { %1827 = vmatmul.mubr.msk.f32.vlgmr.msra.gmra.mrb[8].mxu0 %vm113_vm3, %v670_v60  ;;  %v1492_v60 = vld [vmem:[%s2444_s2 + $0x8] sm:$0xff] }
 0x648   :  { %1848 = vmatprep.mubr.msk.f32.mxu0 %vm2145_vm1, %v2146_v10  ;;  %2001 = vmatpush3.bf16.msra.mxu0 %v2304_v4  ;;  %v2047_v61 = vpack.c.bf16 %v1492_v60, %v1491_v59 }
 0x649   :  { %2002 = vmatprep.subr.bf16.mxu0 %v2144_v3 }
 0x64c   :  { %2004 = vmatpush3.bf16.msra.mxu0 %v2316_v9 }
 0x64d   :  { %2011 = vmatprep.subr.bf16.mxu0 %v2144_v3 }
 0x64f   :  { %1849 = vmatmul.mubr.f32.vlgmr.msra.gmra.mrb[10].mxu0 %v2146_v10 }
 0x650   :  { %2013 = vmatpush3.bf16.msra.mxu0 %v2304_v4  ;;  %1870 = vmatprep.mubr.msk.f32.mxu0 %vm2145_vm1, %v2146_v10 }
 0x651   :  { %2014 = vmatprep.subr.bf16.mxu0 %v2144_v3 }
 0x654   :  { %2016 = vmatpush3.bf16.msra.mxu0 %v2316_v9 }
 0x655   :  { %2023 = vmatprep.subr.bf16.mxu0 %v2144_v3 }
 0x71a   :  { %v739_v11 = vpop.f32.mrb[8].mxu0 }
 0x71b   :  { %v744_v12 = vrot.slane %v739_v11, 2  ;;  %v1828_v13 = vpop.f32.mrb[9].mxu0 }
 0x71d   :  { %v746_v15 = vadd.f32 %v744_v12, %v2238_v19 }
 0x71f   :  { %2078 = vtanh.f32 %v746_v15 }
 0x722   :  { %v911_v19 = vpop.f32.mrb[10].mxu0 }
 0x723   :  { %v1850_v20 = vpop.f32.mrb[11].mxu0 }
 0x729   :  { %v2079_v17 = vpop.eup %2078 }
 0x72a   :  { %748 = vst.msk [vmem:[#allocation2 + $0x8] sm:$0xc0] %vm431_vm6, %v2079_v17  ;;  %749 = vst.msk [vmem:[#allocation6 - $0x6] sm:$0xc0] %vm431_vm6, %v2079_v17 }
 0x731   :  { %v751_v18 = vld [vmem:[#allocation2 + $0x8] sm:$0xff] }
 0x732   :  { %1838 = vmatmul.mubr.msk.f32.vlgmr.msra.gmra.mrb[8].mxu1 %vm113_vm3, %v751_v18 }
 0x733   :  { %2007 = vmatpush3.bf16.msra.mxu1 %v2304_v4  ;;  %1859 = vmatprep.mubr.msk.f32.mxu1 %vm2145_vm1, %v2146_v10 }
 0x734   :  { %2008 = vmatprep.subr.bf16.mxu1 %v2144_v3 }
 0x737   :  { %2010 = vmatpush3.bf16.msra.mxu1 %v2316_v9 }
 0x738   :  { %2017 = vmatprep.subr.bf16.mxu1 %v2144_v3 }
 0x805   :  { %v1839_v23 = vpop.f32.mrb[8].mxu1 }
 0x806   :  { %v2341_v24 = vadd.f32 %v1839_v23, %v763_v22  ;;  %v836_v25 = vpop.f32.mrb[9].mxu1 }
 0x807   :  { %v837_v26 = vadd.f32 %v836_v25, %v763_v22 }
 0x809   :  { %v915_v27 = vadd.f32 %v911_v19, %v837_v26 }
 0x80b   :  { %2080 = vtanh.f32 %v915_v27 }
 0x815   :  { %v2081_v28 = vpop.eup %2080 }
 0x816   :  { %918 = vst.msk [vmem:[#allocation3] sm:$0x1] %vm917_vm7, %v2081_v28  ;;  %1860 = vmatmul.mubr.msk.f32.vlgmr.msra.gmra.mrb[10].mxu1 %vm113_vm3, %v2081_v28 }
 0x817   :  { %920 = vst.msk [vmem:[#allocation3 + $0x7] sm:$0x2] %vm919_vm8, %v2081_v28  ;;  %2019 = vmatpush3.bf16.msra.mxu1 %v2304_v4  ;;  %1881 = vmatprep.mubr.msk.f32.mxu1 %vm2145_vm1, %v2146_v10 }
 0x818   :  { %2020 = vmatprep.subr.bf16.mxu1 %v2144_v3 }
 0x81b   :  { %2022 = vmatpush3.bf16.msra.mxu1 %v2316_v9 }
 0x81c   :  { %2029 = vmatprep.subr.bf16.mxu1 %v2144_v3 }
 0x8e9   :  { %v990_v14 = vpop.f32.mrb[10].mxu1 }
 0x8ea   :  { %v995_v16 = vrot.slane %v990_v14, 6  ;;  %v1861_v29 = vpop.f32.mrb[11].mxu1 }
 0x8ec   :  { %v997_v30 = vadd.f32 %v995_v16, %v837_v26 }
 0x8ee   :  { %2082 = vtanh.f32 %v997_v30 }
 0x8f8   :  { %v2083_v31 = vpop.eup %2082 }
 0x8f9   :  { %1000 = vst.msk [vmem:[#allocation3 - $0x1] sm:$0x4] %vm999_vm9, %v2083_v31  ;;  %v1004_v32 = vrot.slane %v2083_v31, 2 }
 0x8fa   :  { %1002 = vst.msk [vmem:[#allocation3 + $0x6] sm:$0x8] %vm1001_vm10, %v2083_v31 }
 0x8fb   :  { %1871 = vmatmul.mubr.msk.f32.vlgmr.msra.gmra.mrb[12].mxu0 %vm113_vm3, %v1004_v32 }
 0x8fc   :  { %2025 = vmatpush3.bf16.msra.mxu0 %v2304_v4  ;;  %1892 = vmatprep.mubr.msk.f32.mxu0 %vm2145_vm1, %v2146_v10 }
 0x8fd   :  { %2026 = vmatprep.subr.bf16.mxu0 %v2144_v3 }
 0x900   :  { %2028 = vmatpush3.bf16.msra.mxu0 %v2316_v9 }
 0x901   :  { %2035 = vmatprep.subr.bf16.mxu0 %v2144_v3 }
 0x9ce   :  { %v1073_v33 = vpop.f32.mrb[12].mxu0 }
 0x9cf   :  { %v1078_v34 = vrot.slane %v1073_v33, 4  ;;  %v1872_v35 = vpop.f32.mrb[13].mxu0 }
 0x9d1   :  { %v1080_v36 = vadd.f32 %v1078_v34, %v837_v26 }
 0x9d3   :  { %2084 = vtanh.f32 %v1080_v36 }
 0x9dd   :  { %v2085_v37 = vpop.eup %2084 }
 0x9de   :  { %1083 = vst.msk [vmem:[#allocation3 - $0x2] sm:$0x10] %vm1082_vm11, %v2085_v37  ;;  %v1087_v38 = vrot.slane %v2085_v37, 4 }
 0x9df   :  { %1085 = vst.msk [vmem:[#allocation3 + $0x5] sm:$0x20] %vm1084_vm12, %v2085_v37 }
 0x9e0   :  { %1882 = vmatmul.mubr.msk.f32.vlgmr.msra.gmra.mrb[12].mxu1 %vm113_vm3, %v1087_v38 }
 0x9e1   :  { %2031 = vmatpush3.bf16.msra.mxu1 %v2304_v4  ;;  %1903 = vmatprep.mubr.msk.f32.mxu1 %vm2145_vm1, %v2146_v10 }
 0x9e2   :  { %2032 = vmatprep.subr.bf16.mxu1 %v2144_v3 }
 0x9e5   :  { %2034 = vmatpush3.bf16.msra.mxu1 %v2316_v9 }
 0x9e6   :  { %2041 = vmatprep.subr.bf16.mxu1 %v2144_v3 }
 0xab3   :  { %v1156_v39 = vpop.f32.mrb[12].mxu1 }
 0xab4   :  { %v1161_v40 = vrot.slane %v1156_v39, 2  ;;  %v1883_v41 = vpop.f32.mrb[13].mxu1 }
 0xab6   :  { %v1163_v42 = vadd.f32 %v1161_v40, %v837_v26 }
 0xab8   :  { %2086 = vtanh.f32 %v1163_v42 }
 0xac2   :  { %v2087_v43 = vpop.eup %2086 }
 0xac3   :  { %1166 = vst.msk [vmem:[#allocation3 - $0x3] sm:$0x40] %vm1165_vm13, %v2087_v43  ;;  %v1170_v44 = vrot.slane %v2087_v43, 6 }
 0xac4   :  { %1168 = vst.msk [vmem:[#allocation3 + $0x4] sm:$0x80] %vm1167_vm14, %v2087_v43 }
 0xac5   :  { %1893 = vmatmul.mubr.msk.f32.vlgmr.msra.gmra.mrb[14].mxu0 %vm113_vm3, %v1170_v44 }
 0xac6   :  { %2037 = vmatpush3.bf16.msra.mxu0 %v2304_v4  ;;  %1914 = vmatprep.mubr.msk.f32.mxu0 %vm2145_vm1, %v2146_v10 }
 0xac7   :  { %2038 = vmatprep.subr.bf16.mxu0 %v2144_v3 }
 0xaca   :  { %2040 = vmatpush3.bf16.msra.mxu0 %v2316_v9 }
 0xacb   :  { %2048 = vmatprep.subr.bf16.mxu0 %v2047_v61 }
 0xb98   :  { %v1239_v45 = vpop.f32.mrb[14].mxu0 }
 0xb99   :  { %v1243_v46 = vadd.f32 %v1239_v45, %v2341_v24  ;;  %v1894_v47 = vpop.f32.mrb[15].mxu0 }
 0xb9b   :  { %2088 = vtanh.f32 %v1243_v46 }
 0xba5   :  { %v2089_v48 = vpop.eup %2088 }
 0xba6   :  { %1245 = vst.msk [vmem:[#allocation3 + $0x4] sm:$0x1] %vm917_vm7, %v2089_v48  ;;  %1904 = vmatmul.mubr.msk.f32.vlgmr.msra.gmra.mrb[14].mxu1 %vm113_vm3, %v2089_v48 }
 0xba7   :  { %1246 = vst.msk [vmem:[#allocation3 + $0xb] sm:$0x2] %vm919_vm8, %v2089_v48  ;;  %2043 = vmatpush3.bf16.msra.mxu1 %v2304_v4  ;;  %1925 = vmatprep.mubr.msk.f32.mxu1 %vm2145_vm1, %v2146_v10 }
 0xba8   :  { %2044 = vmatprep.subr.bf16.mxu1 %v2144_v3 }
 0xbab   :  { %2046 = vmatpush3.bf16.msra.mxu1 %v2316_v9 }
 0xc79   :  { %v1316_v49 = vpop.f32.mrb[14].mxu1 }
 0xc7a   :  { %v1321_v50 = vrot.slane %v1316_v49, 6  ;;  %v1905_v51 = vpop.f32.mrb[15].mxu1 }
 0xc7c   :  { %v1323_v52 = vadd.f32 %v1321_v50, %v2341_v24 }
 0xc7e   :  { %2090 = vtanh.f32 %v1323_v52 }
 0xc88   :  { %v2091_v53 = vpop.eup %2090 }
 0xc89   :  { %1325 = vst.msk [vmem:[#allocation3 + $0x3] sm:$0x4] %vm999_vm9, %v2091_v53  ;;  %v1328_v54 = vrot.slane %v2091_v53, 2 }
 0xc8a   :  { %1326 = vst.msk [vmem:[#allocation3 + $0xa] sm:$0x8] %vm1001_vm10, %v2091_v53 }
 0xc8b   :  { %1915 = vmatmul.mubr.msk.f32.vlgmr.msra.gmra.mrb[16].mxu0 %vm113_vm3, %v1328_v54 }
 0xc8c   :  { %2050 = vmatpush3.bf16.msra.mxu0 %v2047_v61 }
 0xc8d   :  { %2052 = vmatprep.subr.bf16.mxu0 %v2051_v0 }
 0xc90   :  { %2054 = vmatpush3.bf16.msra.mxu0 %v2051_v0 }
 0xd5e   :  { %v1397_v55 = vpop.f32.mrb[16].mxu0 }
 0xd5f   :  { %v1402_v10 = vrot.slane %v1397_v55, 4  ;;  %v1916_v56 = vpop.f32.mrb[17].mxu0 }
 0xd61   :  { %v1404_v3 = vadd.f32 %v1402_v10, %v2341_v24 }
 0xd63   :  { %2092 = vtanh.f32 %v1404_v3 }
 0xd6d   :  { %v2093_v57 = vpop.eup %2092 }
 0xd6e   :  { %1406 = vst.msk [vmem:[#allocation3 + $0x2] sm:$0x10] %vm1082_vm11, %v2093_v57  ;;  %v1409_v58 = vrot.slane %v2093_v57, 4 }
 0xd6f   :  { %1407 = vst.msk [vmem:[#allocation3 + $0x9] sm:$0x20] %vm1084_vm12, %v2093_v57 }
 0xd70   :  { %1926 = vmatmul.mubr.msk.f32.vlgmr.msra.gmra.mrb[16].mxu1 %vm113_vm3, %v1409_v58 }
 0xe43   :  { %v1478_v1 = vpop.f32.mrb[16].mxu1 }
 0xe44   :  { %v1483_v2 = vrot.slane %v1478_v1, 2  ;;  %v1927_v4 = vpop.f32.mrb[17].mxu1 }
 0xe46   :  { %v1485_v5 = vadd.f32 %v1483_v2, %v2341_v24 }
 0xe48   :  { %2094 = vtanh.f32 %v1485_v5 }
 0xe52   :  { %v2095_v6 = vpop.eup %2094 }
 0xe53   :  { %1487 = vst.msk [vmem:[#allocation3 + $0x1] sm:$0x40] %vm1165_vm13, %v2095_v6 }
 0xe54   :  { %1488 = vst.msk [vmem:[#allocation3 + $0x8] sm:$0x80] %vm1167_vm14, %v2095_v6 }
 0xe55   :  { %1490 = vst.msk [vmem:[#allocation6 - $0x4] sm:$0xc0] %vm431_vm6, %v2095_v6 }
 0xe5a   :  { %v1496_v7 = vld [vmem:[#allocation3] sm:$0xff] }
 0xe5b   :  { %v1497_v8 = vld [vmem:[#allocation3 + $0x8] sm:$0xff]  ;;  %1936 = vmatprep.mubr.msk.f32.mxu0 %vm113_vm3, %v1496_v7 }
 0xe5c   :  { %1937 = vmatmul.mubr.msk.f32.vlgmr.msra.gmra.mrb[18].mxu0 %vm113_vm3, %v1497_v8 }
 0xe5d   :  { %2107 = shalt.err (!%p2104_p4)
}
 0xe5e   :  { %s2108_s7 = scalar_lea.hbm %s2446_s4, 64 }
 0xe5f   :  { %p2109_p5 = scmp.ne.s32.totalorder %s2446_s4, %s2108_s7  ;;  %p2112_p6 = scmp.lt.u32.totalorder %s2108_s7, %s2446_s4 }
 0xe61   :  { %p2114_p7 = pnand %p2112_p6, %p2109_p5 }
 0xe63   :  { %2117 = shalt.err (!%p2114_p7)
}
 0xe64   :  { %s2148_s12 = smov 32   ;;  %s2149_s13 = smov 2   ;;  %v1635_v9 = vld [vmem:[%s2444_s2 + $0x20] ss:$0 sm:$0xff] }
 0xe65   :  { %1608 = dma.vmem_to_hbm [thread:$0]  %s1603_s30, 64, %s2446_s4, [#allocation7], %s2148_s12, %s2148_s12, %s2149_s13  }
 0xe66   :  { %s2150_s18 = smov [#allocation4]  }
 0xe67   :  { %s1590_s19 = sshll.u32 %s2150_s18, 4  ;;  %s1591_s19 = int_to_ptr.vmem [resolvable:$true] %s1590_s19 }
 0xe68   :  { %s2118_s20 = scalar_lea.vmem %s1591_s19, 256  ;;  %p2123_p9 = scmp.lt.s32.totalorder %s1591_s19, %s1591_s19 }
 0xe69   :  { %p2119_p8 = scmp.ne.s32.totalorder %s1591_s19, %s2118_s20  ;;  %p2124_p10 = scmp.lt.s32.totalorder %s2118_s20, %s2118_s20 }
 0xe6b   :  { %p2125_p11 = por %p2124_p10, %p2123_p9 }
 0xe6d   :  { %p2126_p12 = pnand %p2125_p11, %p2119_p8 }
 0xf2f   :  { %v1938_v11 = vpop.f32.mrb[18].mxu0 }
 0xf30   :  { %v1580_v12 = vadd.f32 %v1938_v11, %v1635_v9  ;;  %v1574_v13 = vpop.f32.mrb[19].mxu0 }
 0xf31   :  { %v1575_v15 = vadd.f32 %v1635_v9, %v1574_v13 }
 0xf32   :  { %1584 = vst.msk [vmem:[#allocation4 + $0x8] sm:$0xff] %vm31_vm0, %v1580_v12 }
 0xf33   :  { %1583 = vst.msk [vmem:[#allocation4] sm:$0xff] %vm31_vm0, %v1575_v15 }
 0xf34   :  { %2129 = shalt.err (!%p2126_p12)
}
 0xf35   :  { %s2130_s21 = scalar_lea.hbm %s2445_s3, 256 }
 0xf36   :  { %p2131_p13 = scmp.ne.s32.totalorder %s2445_s3, %s2130_s21  ;;  %p2134_p0 = scmp.lt.u32.totalorder %s2130_s21, %s2445_s3 }
 0xf38   :  { %p2136_p1 = pnand %p2134_p0, %p2131_p13 }
 0xf3a   :  { %2139 = shalt.err (!%p2136_p1)
}
 0xf3b   :  { %s2151_s25 = smov 128   ;;  %s2152_s26 = smov 8  }
 0xf3c   :  { %1596 = dma.vmem_to_hbm [thread:$0]  %s1591_s19, 256, %s2445_s3, [#allocation5], %s2151_s25, %s2151_s25, %s2152_s26  }
 0xf3d   :  { %2140 = dma.done.wait [#allocation5], 256  }
 0xf3e   :  { %2141 = vsyncadd [#allocation5], 4294967040 }
 0xf3f   :  { %2142 = dma.done.wait [#allocation7], 64  }
 0xf40   :  { %2143 = vsyncadd [#allocation7], 4294967232 }
 0xf41   :  { %1615 = vsyncpa [#allocation5], 1 }
 0xf42   :  { %1616 = vsyncpa [#allocation7], 1 }

</bundles_post_ra>
